<compile_context>
chip_gen: v7x
topology: tpu7x:2x2x1
jax: 0.10.0
libtpu: 0.0.40
codegen_flags: <defaults>
</compile_context>

<pallas_src>
import functools

import jax
import jax.numpy as jnp
from jax.experimental import pallas as pl
from jax.experimental.pallas import tpu as pltpu


def _round_up(x, m):
    return ((x + m - 1) // m) * m


# -----------------------------------------------------------------------------
# Parameters (torch layout: W is [out, in], bias is [out]; Xavier-normal, b=0.01)
# -----------------------------------------------------------------------------
def init_sparse_autoencoder_params(key, input_dim):
    dims = [
        (14, input_dim), (7, 14), (3, 7),      # encoder
        (7, 3), (14, 7), (input_dim, 14),      # decoder
    ]
    keys = jax.random.split(key, len(dims))
    params = []
    for k, (fan_out, fan_in) in zip(keys, dims):
        std = (2.0 / (fan_in + fan_out)) ** 0.5
        w = jax.random.normal(k, (fan_out, fan_in), dtype=jnp.float32) * std
        b = jnp.full((fan_out,), 0.01, dtype=jnp.float32)
        params.append((w, b))
    return params


def pack_params(params):
    """Pack all weights/biases into one lane-aligned f32 slab (done once, host side).

    Layer i occupies rows [row_offsets[i] : row_offsets[i] + out_i] (offsets are
    8-aligned; the padded rows/cols are zero). Weight sits in columns [0:in_i];
    the bias sits in the last column (bias_col).
    """
    layer_dims = tuple((int(w.shape[0]), int(w.shape[1])) for w, _ in params)
    max_in = max(d_in for _, d_in in layer_dims)
    n_cols = _round_up(max_in + 1, 128)
    bias_col = n_cols - 1

    row_offsets = []
    r = 0
    for d_out, _ in layer_dims:
        row_offsets.append(r)
        r += _round_up(d_out, 8)
    n_rows = _round_up(r, 8)

    slab = jnp.zeros((n_rows, n_cols), dtype=jnp.float32)
    for (w, b), r0, (d_out, d_in) in zip(params, row_offsets, layer_dims):
        slab = slab.at[r0:r0 + d_out, 0:d_in].set(w.astype(jnp.float32))
        slab = slab.at[r0:r0 + d_out, bias_col].set(b.astype(jnp.float32))
    return slab, layer_dims, tuple(row_offsets), bias_col


# -----------------------------------------------------------------------------
# Kernel: natural [tile_b, D] tiles in/out; [feat, batch] (batch-on-lanes) compute
# -----------------------------------------------------------------------------
def _make_kernel(layer_dims, row_offsets, bias_col):
    enc_dim = layer_dims[2][0]            # 3
    enc_pad = _round_up(enc_dim, 8)       # 8 (padding rows of the slab are zero)

    def kernel(x_ref, p_ref, dec_ref, enc_ref):
        def wb(idx, pad_out=None, pad_in=None):
            d_out, d_in = layer_dims[idx]
            d_out = pad_out if pad_out is not None else d_out
            d_in = pad_in if pad_in is not None else d_in
            r0 = row_offsets[idx]
            w = p_ref[r0:r0 + d_out, 0:d_in]                    # [out, in]  (ref slice)
            b = p_ref[r0:r0 + d_out, bias_col:bias_col + 1]     # [out, 1]
            return w, b

        x_bd = x_ref[...].astype(jnp.float32)                   # [tile_b, D]

        # ---- encoder: the [tile_b,D] -> [D,tile_b] transpose is fused into the
        #      first matmul (transposed-RHS contraction). ----
        w0, b0 = wb(0)
        h = jax.lax.dot_general(w0, x_bd, (((1,), (1,)), ((), ())),
                                preferred_element_type=jnp.float32) + b0       # [14, tb]
        h = jnp.maximum(h, 0.0)

        w1, b1 = wb(1)
        h = jnp.maximum(jnp.dot(w1, h, preferred_element_type=jnp.float32) + b1,
                        0.0)                                                   # [7, tb]

        # encoder head, padded to 8 output rows (rows 3..7 are exactly zero)
        w2, b2 = wb(2, pad_out=enc_pad)
        enc8 = jnp.dot(w2, h, preferred_element_type=jnp.float32) + b2         # [8, tb]

        # ---- decoder: layer-3 weight padded to 8 input cols (padded cols are 0),
        #      so it consumes the padded head directly. ----
        w3, b3 = wb(3, pad_in=enc_pad)
        g = jnp.maximum(jnp.dot(w3, enc8, preferred_element_type=jnp.float32) + b3,
                        0.0)                                                   # [7, tb]
        w4, b4 = wb(4)
        g = jnp.maximum(jnp.dot(w4, g, preferred_element_type=jnp.float32) + b4,
                        0.0)                                                   # [14, tb]
        w5, b5 = wb(5)
        dec = jax.nn.sigmoid(
            jnp.dot(w5, g, preferred_element_type=jnp.float32) + b5)           # [D, tb]

        # Batch-major stores; in-kernel transposes use the XLU and overlap with DMA.
        dec_ref[...] = dec.T.astype(dec_ref.dtype)                             # [tb, D]
        enc_ref[...] = enc8.T[:, :enc_dim].astype(enc_ref.dtype)               # [tb, 3]

    return kernel


# -----------------------------------------------------------------------------
# Wrapper
# -----------------------------------------------------------------------------
def _select_tile_b(batch, requested):
    """512-aligned batch tile; single tile for small batches, >=2 steps otherwise."""
    requested = max(512, (int(requested) // 512) * 512)
    if batch <= 512:
        return _round_up(batch, 8)
    # keep at least 2 grid steps so both v7x TensorCores get work
    cap = _round_up((batch + 1) // 2, 512)
    return max(512, min(requested, cap))


@functools.partial(
    jax.jit,
    static_argnames=("layer_dims", "row_offsets", "bias_col", "tile_b"))
def sparse_autoencoder_forward(x, slab, *, layer_dims, row_offsets, bias_col,
                               tile_b=8192):
    """Forward pass. x: [B, input_dim]. Returns (decoded [B, D], encoded [B, 3])."""
    B, D = x.shape
    if D != layer_dims[0][1]:
        raise ValueError("input_dim mismatch with packed parameters")
    enc_dim = layer_dims[2][0]

    tb = _select_tile_b(B, tile_b)
    grid = (pl.cdiv(B, tb),)

    # Natural-layout blocks with a 16-wide minor dim are lane-padded to 128 in
    # VMEM; size the scoped-VMEM limit from the (double-buffered) block footprint.
    vmem_limit = int(min(128 * 1024 * 1024,
                         max(32 * 1024 * 1024, 6 * tb * 128 * 4 + 24 * 1024 * 1024)))

    kernel = _make_kernel(layer_dims, row_offsets, bias_col)

    decoded, encoded = pl.pallas_call(
        kernel,
        out_shape=(
            jax.ShapeDtypeStruct((B, D), jnp.float32),
            jax.ShapeDtypeStruct((B, enc_dim), jnp.float32),
        ),
        grid_spec=pltpu.PrefetchScalarGridSpec(
            num_scalar_prefetch=0,
            grid=grid,
            in_specs=[
                pl.BlockSpec((tb, D), lambda i: (i, 0)),        # natural [B, D] tiles
                pl.BlockSpec(slab.shape, lambda i: (0, 0)),     # packed params (fetched once)
            ],
            out_specs=[
                pl.BlockSpec((tb, D), lambda i: (i, 0)),        # decoded
                pl.BlockSpec((tb, enc_dim), lambda i: (i, 0)),  # encoded
            ],
        ),
        compiler_params=pltpu.CompilerParams(
            dimension_semantics=("parallel",),
            vmem_limit_bytes=vmem_limit,
        ),
    )(x, slab)
    return decoded, encoded


# -----------------------------------------------------------------------------
# Pure-JAX reference (torch-layout weights: y = x @ W.T + b)
# -----------------------------------------------------------------------------
def _reference_forward(x, params):
    h = jnp.maximum(x @ params[0][0].T + params[0][1], 0.0)
    h = jnp.maximum(h @ params[1][0].T + params[1][1], 0.0)
    enc = h @ params[2][0].T + params[2][1]
    g = jnp.maximum(enc @ params[3][0].T + params[3][1], 0.0)
    g = jnp.maximum(g @ params[4][0].T + params[4][1], 0.0)
    dec = jax.nn.sigmoid(g @ params[5][0].T + params[5][1])
    return dec, enc


if __name__ == "__main__":
    key = jax.random.PRNGKey(0)
    k_data, k_params = jax.random.split(key)

    B, INPUT_DIM = 16, 16
    x = jax.random.uniform(k_data, (B, INPUT_DIM), dtype=jnp.float32)
    params = init_sparse_autoencoder_params(k_params, INPUT_DIM)

    # Pack once at init (hoisted out of the jitted forward).
    slab, layer_dims, row_offsets, bias_col = pack_params(params)
    jax.block_until_ready(slab)

    decoded, encoded = sparse_autoencoder_forward(
        x, slab, layer_dims=layer_dims, row_offsets=row_offsets, bias_col=bias_col)
    jax.block_until_ready((decoded, encoded))

    dec_ref, enc_ref = _reference_forward(x, params)
    assert decoded.shape == (B, INPUT_DIM) and encoded.shape == (B, 3)
    assert jnp.allclose(decoded, dec_ref, atol=1e-5, rtol=1e-5)
    assert jnp.allclose(encoded, enc_ref, atol=1e-5, rtol=1e-5)

    # TODO(synk): kl_divergence / sparse_loss are training-loss helpers, not part
    # of forward(); they are intentionally not kernelized here.
    print("KERNEL_OK")
</pallas_src>

<mosaic_0001>
module attributes {stable_mosaic.version = 11 : i64} {
  func.func @kernel(%arg0: i32, %arg1: memref<16x16xf32, #tpu.memory_space<vmem>>, %arg2: memref<72x128xf32, #tpu.memory_space<vmem>>, %arg3: memref<16x16xf32, #tpu.memory_space<vmem>>, %arg4: memref<16x3xf32, #tpu.memory_space<vmem>>) attributes {dimension_semantics = [#tpu.dimension_semantics<parallel>], iteration_bounds = array<i64: 1>, scalar_prefetch = 0 : i64, scratch_operands = 0 : i64, tpu.core_type = #tpu.core_type<tc>, window_params = [{transform_indices = @transform_0, window_bounds = array<i64: 16, 16>}, {pipeline_mode = #tpu.pipeline_mode<synchronous>, transform_indices = @transform_1, window_bounds = array<i64: 72, 128>}, {transform_indices = @transform_2, window_bounds = array<i64: 16, 16>}, {transform_indices = @transform_3, window_bounds = array<i64: 16, 3>}]} {
    %c0 = arith.constant 0 : index
    %c0_0 = arith.constant 0 : index
    %0 = vector.load %arg1[%c0, %c0_0] : memref<16x16xf32, #tpu.memory_space<vmem>>, vector<16x16xf32>
    %c0_1 = arith.constant 0 : index
    %c0_2 = arith.constant 0 : index
    %1 = vector.load %arg2[%c0_1, %c0_2] : memref<72x128xf32, #tpu.memory_space<vmem>>, vector<14x16xf32>
    %c0_3 = arith.constant 0 : index
    %c127 = arith.constant 127 : index
    %2 = vector.load %arg2[%c0_3, %c127] : memref<72x128xf32, #tpu.memory_space<vmem>>, vector<14x1xf32>
    %cst = arith.constant dense<0.000000e+00> : vector<14x16xf32>
    %3 = tpu.matmul %1, %0, %cst {dimension_numbers = #tpu.dot_dimension_numbers<[1], [1], [0], [0], [0, 0, 1, 0], [], []>} : vector<14x16xf32>, vector<16x16xf32>, vector<14x16xf32> -> vector<14x16xf32>
    %4 = vector.broadcast %2 : vector<14x1xf32> to vector<14x16xf32>
    %5 = arith.addf %3, %4 : vector<14x16xf32>
    %cst_4 = arith.constant 0.000000e+00 : f32
    %6 = vector.broadcast %cst_4 : f32 to vector<14x16xf32>
    %7 = arith.maximumf %5, %6 : vector<14x16xf32>
    %c16 = arith.constant 16 : index
    %c0_5 = arith.constant 0 : index
    %8 = vector.load %arg2[%c16, %c0_5] : memref<72x128xf32, #tpu.memory_space<vmem>>, vector<7x14xf32>
    %c16_6 = arith.constant 16 : index
    %c127_7 = arith.constant 127 : index
    %9 = vector.load %arg2[%c16_6, %c127_7] : memref<72x128xf32, #tpu.memory_space<vmem>>, vector<7x1xf32>
    %cst_8 = arith.constant dense<0.000000e+00> : vector<7x16xf32>
    %10 = tpu.matmul %8, %7, %cst_8 {dimension_numbers = #tpu.dot_dimension_numbers<[1], [0], [0], [1], [0, 0, 1, 1], [], []>} : vector<7x14xf32>, vector<14x16xf32>, vector<7x16xf32> -> vector<7x16xf32>
    %11 = vector.broadcast %9 : vector<7x1xf32> to vector<7x16xf32>
    %12 = arith.addf %10, %11 : vector<7x16xf32>
    %cst_9 = arith.constant 0.000000e+00 : f32
    %13 = vector.broadcast %cst_9 : f32 to vector<7x16xf32>
    %14 = arith.maximumf %12, %13 : vector<7x16xf32>
    %c24 = arith.constant 24 : index
    %c0_10 = arith.constant 0 : index
    %15 = vector.load %arg2[%c24, %c0_10] : memref<72x128xf32, #tpu.memory_space<vmem>>, vector<8x7xf32>
    %c24_11 = arith.constant 24 : index
    %c127_12 = arith.constant 127 : index
    %16 = vector.load %arg2[%c24_11, %c127_12] : memref<72x128xf32, #tpu.memory_space<vmem>>, vector<8x1xf32>
    %cst_13 = arith.constant dense<0.000000e+00> : vector<8x16xf32>
    %17 = tpu.matmul %15, %14, %cst_13 {dimension_numbers = #tpu.dot_dimension_numbers<[1], [0], [0], [1], [0, 0, 1, 1], [], []>} : vector<8x7xf32>, vector<7x16xf32>, vector<8x16xf32> -> vector<8x16xf32>
    %18 = vector.broadcast %16 : vector<8x1xf32> to vector<8x16xf32>
    %19 = arith.addf %17, %18 : vector<8x16xf32>
    %c32 = arith.constant 32 : index
    %c0_14 = arith.constant 0 : index
    %20 = vector.load %arg2[%c32, %c0_14] : memref<72x128xf32, #tpu.memory_space<vmem>>, vector<7x8xf32>
    %c32_15 = arith.constant 32 : index
    %c127_16 = arith.constant 127 : index
    %21 = vector.load %arg2[%c32_15, %c127_16] : memref<72x128xf32, #tpu.memory_space<vmem>>, vector<7x1xf32>
    %cst_17 = arith.constant dense<0.000000e+00> : vector<7x16xf32>
    %22 = tpu.matmul %20, %19, %cst_17 {dimension_numbers = #tpu.dot_dimension_numbers<[1], [0], [0], [1], [0, 0, 1, 1], [], []>} : vector<7x8xf32>, vector<8x16xf32>, vector<7x16xf32> -> vector<7x16xf32>
    %23 = vector.broadcast %21 : vector<7x1xf32> to vector<7x16xf32>
    %24 = arith.addf %22, %23 : vector<7x16xf32>
    %cst_18 = arith.constant 0.000000e+00 : f32
    %25 = vector.broadcast %cst_18 : f32 to vector<7x16xf32>
    %26 = arith.maximumf %24, %25 : vector<7x16xf32>
    %c40 = arith.constant 40 : index
    %c0_19 = arith.constant 0 : index
    %27 = vector.load %arg2[%c40, %c0_19] : memref<72x128xf32, #tpu.memory_space<vmem>>, vector<14x7xf32>
    %c40_20 = arith.constant 40 : index
    %c127_21 = arith.constant 127 : index
    %28 = vector.load %arg2[%c40_20, %c127_21] : memref<72x128xf32, #tpu.memory_space<vmem>>, vector<14x1xf32>
    %cst_22 = arith.constant dense<0.000000e+00> : vector<14x16xf32>
    %29 = tpu.matmul %27, %26, %cst_22 {dimension_numbers = #tpu.dot_dimension_numbers<[1], [0], [0], [1], [0, 0, 1, 1], [], []>} : vector<14x7xf32>, vector<7x16xf32>, vector<14x16xf32> -> vector<14x16xf32>
    %30 = vector.broadcast %28 : vector<14x1xf32> to vector<14x16xf32>
    %31 = arith.addf %29, %30 : vector<14x16xf32>
    %cst_23 = arith.constant 0.000000e+00 : f32
    %32 = vector.broadcast %cst_23 : f32 to vector<14x16xf32>
    %33 = arith.maximumf %31, %32 : vector<14x16xf32>
    %c56 = arith.constant 56 : index
    %c0_24 = arith.constant 0 : index
    %34 = vector.load %arg2[%c56, %c0_24] : memref<72x128xf32, #tpu.memory_space<vmem>>, vector<16x14xf32>
    %c56_25 = arith.constant 56 : index
    %c127_26 = arith.constant 127 : index
    %35 = vector.load %arg2[%c56_25, %c127_26] : memref<72x128xf32, #tpu.memory_space<vmem>>, vector<16x1xf32>
    %cst_27 = arith.constant dense<0.000000e+00> : vector<16x16xf32>
    %36 = tpu.matmul %34, %33, %cst_27 {dimension_numbers = #tpu.dot_dimension_numbers<[1], [0], [0], [1], [0, 0, 1, 1], [], []>} : vector<16x14xf32>, vector<14x16xf32>, vector<16x16xf32> -> vector<16x16xf32>
    %37 = vector.broadcast %35 : vector<16x1xf32> to vector<16x16xf32>
    %38 = arith.addf %36, %37 : vector<16x16xf32>
    %39 = arith.negf %38 : vector<16x16xf32>
    %40 = math.exp %39 : vector<16x16xf32>
    %cst_28 = arith.constant 1.000000e+00 : f32
    %41 = vector.broadcast %cst_28 : f32 to vector<16x16xf32>
    %42 = arith.addf %41, %40 : vector<16x16xf32>
    %43 = arith.divf %41, %42 : vector<16x16xf32>
    %44 = tpu.transpose %43, [1, 0] : vector<16x16xf32> -> vector<16x16xf32>
    %c0_29 = arith.constant 0 : index
    %c0_30 = arith.constant 0 : index
    %45 = vector.load %arg3[%c0_29, %c0_30] : memref<16x16xf32, #tpu.memory_space<vmem>>, vector<16x16xf32>
    tpu.vector_store %arg3[%c0_29, %c0_30], %44 {strides = array<i32>} : memref<16x16xf32, #tpu.memory_space<vmem>>, vector<16x16xf32>,
    %46 = tpu.transpose %19, [1, 0] : vector<8x16xf32> -> vector<16x8xf32>
    %47 = vector.extract_strided_slice %46 {offsets = [0, 0], sizes = [16, 3], strides = [1, 1]} : vector<16x8xf32> to vector<16x3xf32>
    %c0_31 = arith.constant 0 : index
    %c0_32 = arith.constant 0 : index
    %48 = vector.load %arg4[%c0_31, %c0_32] : memref<16x3xf32, #tpu.memory_space<vmem>>, vector<16x3xf32>
    tpu.vector_store %arg4[%c0_31, %c0_32], %47 {strides = array<i32>} : memref<16x3xf32, #tpu.memory_space<vmem>>, vector<16x3xf32>,
    return
  }
  func.func @transform_0(%arg0: i32) -> (i32, i32) {
    %c0_i32 = arith.constant 0 : i32
    %c0_i32_0 = arith.constant 0 : i32
    return %arg0, %c0_i32 : i32, i32
  }
  func.func @transform_1(%arg0: i32) -> (i32, i32) {
    %c0_i32 = arith.constant 0 : i32
    %c0_i32_0 = arith.constant 0 : i32
    %c0_i32_1 = arith.constant 0 : i32
    return %c0_i32, %c0_i32_0 : i32, i32
  }
  func.func @transform_2(%arg0: i32) -> (i32, i32) {
    %c0_i32 = arith.constant 0 : i32
    %c0_i32_0 = arith.constant 0 : i32
    return %arg0, %c0_i32 : i32, i32
  }
  func.func @transform_3(%arg0: i32) -> (i32, i32) {
    %c0_i32 = arith.constant 0 : i32
    %c0_i32_0 = arith.constant 0 : i32
    return %arg0, %c0_i32 : i32, i32
  }
}

</mosaic_0001>

<bundles_post_ra>
// kernel: sparse_autoencoder_forward.1
= control target key start
LH: loop header
LB: loop body
LE: loop exit
PB: predicated region body
PF: predicated region fallthrough
CT: control target
= control target key end

     0   :  { %9 = vsyncpa [#allocation3], 0  ;;  %s980_s0 = inlined_call_operand.hbm [shape: f32[16,16], index: 0, kind: input, shape index: {}]   ;;  %s981_s1 = inlined_call_operand.hbm [shape: f32[72,128], index: 1, kind: input, shape index: {}]   ;;  %s982_s2 = inlined_call_operand.hbm [shape: f32[16,16], index: 2, kind: output, shape index: {0}]   ;;  %s983_s3 = inlined_call_operand.vmem [shape: f32[16,3], index: 3, kind: output, shape index: {1}]  }
   0x1   :  { %10 = vsyncpa [#allocation6], 0 }
   0x2   :  { %11 = vsyncpa [#allocation4], 0  ;;  %s863_s12 = smov [#allocation2]   ;;  %s791_s16 = scalar_lea.hbm %s980_s0, 256 }
   0x3   :  { %s17_s13 = sshll.u32 %s863_s12, 4  ;;  %p792_p0 = scmp.ne.s32.totalorder %s980_s0, %s791_s16  ;;  %s18_s13 = int_to_ptr.vmem [resolvable:$true] %s17_s13 }
   0x4   :  { %p795_p1 = scmp.lt.u32.totalorder %s791_s16, %s980_s0 }
   0x6   :  { %p797_p2 = pnand %p795_p1, %p792_p0 }
   0x8   :  { %800 = shalt.err (!%p797_p2)
}
   0x9   :  { %s801_s21 = scalar_lea.vmem %s18_s13, 256  ;;  %p806_p4 = scmp.lt.s32.totalorder %s18_s13, %s18_s13 }
   0xa   :  { %p802_p3 = scmp.ne.s32.totalorder %s18_s13, %s801_s21  ;;  %p807_p5 = scmp.lt.s32.totalorder %s801_s21, %s801_s21 }
   0xc   :  { %p808_p6 = por %p807_p5, %p806_p4 }
   0xe   :  { %p809_p7 = pnand %p808_p6, %p802_p3 }
  0x10   :  { %812 = shalt.err (!%p809_p7)
}
  0x11   :  { %s864_s22 = smov 128   ;;  %s865_s23 = smov 8  }
  0x12   :  { %23 = dma.hbm_to_vmem [thread:$0]  %s980_s0, 256, %s18_s13, [#allocation3], %s864_s22, %s864_s22, %s865_s23  }
  0x13   :  { %s866_s26 = smov [#allocation5]   ;;  %s813_s30 = scalar_lea.hbm %s981_s1, 1152 }
  0x14   :  { %s29_s27 = sshll.u32 %s866_s26, 4  ;;  %p814_p8 = scmp.ne.s32.totalorder %s981_s1, %s813_s30  ;;  %s30_s27 = int_to_ptr.vmem [resolvable:$true] %s29_s27 }
  0x15   :  { %p817_p9 = scmp.lt.u32.totalorder %s813_s30, %s981_s1 }
  0x17   :  { %p819_p10 = pnand %p817_p9, %p814_p8 }
  0x19   :  { %822 = shalt.err (!%p819_p10)
}
  0x1a   :  { %s823_s8 = scalar_lea.vmem %s30_s27, 1152  ;;  %p828_p12 = scmp.lt.s32.totalorder %s30_s27, %s30_s27 }
  0x1b   :  { %p824_p11 = scmp.ne.s32.totalorder %s30_s27, %s823_s8  ;;  %p829_p13 = scmp.lt.s32.totalorder %s823_s8, %s823_s8 }
  0x1d   :  { %p830_p0 = por %p829_p13, %p828_p12 }
  0x1f   :  { %p831_p1 = pnand %p830_p0, %p824_p11 }
  0x21   :  { %834 = shalt.err (!%p831_p1)
}
  0x22   :  { %35 = dma.hbm_to_vmem [thread:$0]  %s981_s1, 1152, %s30_s27, [#allocation6], %s864_s22, %s864_s22, %s865_s23  }
  0x23   :  { %857 = dma.done.wait [#allocation3], 256  }
  0x24   :  { %858 = vsyncadd [#allocation3], 4294967040 }
  0x25   :  { %859 = dma.done.wait [#allocation6], 1152  }
  0x26   :  { %860 = vsyncadd [#allocation6], 4294966144  ;;  %v867_v0 = vmov 127   ;;  %vm56_vm0 = vcmask 130048   ;;  %v42_v1 = vld [vmem:[#allocation2] sm:$0xff]  ;;  %v43_v2 = vld [vmem:[#allocation2 + $0x8] sm:$0xff] }
  0x27   :  { %781 = vset.pattern.permute.xlu0 %v867_v0  ;;  %782 = vset.pattern.permute.xlu1 %v867_v0  ;;  %vm756_vm1 = vmpackc.low %vm56_vm0, %vm56_vm0  ;;  %v44_v3 = vld [vmem:[#allocation5] sm:$0xff]  ;;  %v755_v4 = vpack.c.bf16 %v43_v2, %v42_v1  ;;  %v45_v5 = vld [vmem:[#allocation5 + $0x8] sm:$0x3f]  ;;  %v868_v9 = vmov 0.0|0.0   ;;  %vm869_vm2 = vmmov 0   ;;  %v870_v11 = vmov 0.0  }
  0x28   :  { %723 = vmatprep.mubr.msk.f32.mxu0 %vm56_vm0, %v44_v3  ;;  %48 = vperm.xlu0 %781, %v44_v3   ;;  %v311_v6 = vld [vmem:[#allocation5 + $0x20] sm:$0x7f]  ;;  %v926_v7 = vld [vmem:[#allocation5 + $0x30] sm:$0x3f]  ;;  %v228_v12 = vld [vmem:[#allocation5 + $0x18] sm:$0xff]  ;;  %vm153_vm3 = vcmask 1045504  }
  0x29   :  { %757 = vmatprep.subr.msk.bf16.mxu0 %vm756_vm1, %v755_v4  ;;  %v930_v8 = vld [vmem:[#allocation5 + $0x40] sm:$0xff]  ;;  %761 = vmatprep.subr.bf16.mxu1 %v868_v9  ;;  %v144_v10 = vld [vmem:[#allocation5 + $0x10] sm:$0x7f]  ;;  %v391_v13 = vld [vmem:[#allocation5 + $0x28] sm:$0xff]  ;;  %vm871_vm4 = vmmov 1   ;;  %vm150_vm6 = vcmask 113664  }
  0x2a   :  { %760 = vmatpush3.bf16.xpose.msk.msra.mxu0 %vm756_vm1, %v755_v4  ;;  %730 = vmatprep.mubr.msk.f32.mxu1 %vm869_vm2, %v870_v11  ;;  %v487_v14 = vld [vmem:[#allocation5 + $0x38] sm:$0xff]  ;;  %vm935_vm5 = vmpackc.low %vm153_vm3, %vm871_vm4  ;;  %vm237_vm7 = vcmask 1046528   ;;  %vm234_vm8 = vcmask 56320   ;;  %vm317_vm9 = vcmask 64512   ;;  %vm659_vm10 = vcmask 23552   ;;  %s872_s13 = smov [#allocation7]  }
  0x2b   :  { %147 = vperm.xlu1 %782, %v144_v10   ;;  %738 = vmatprep.subr.mxu0 %v870_v11  ;;  %s667_s14 = sshll.u32 %s872_s13, 4  ;;  %s668_s14 = int_to_ptr.vmem [resolvable:$true] %s667_s14 }
  0x2c   :  { %53 = vperm.xlu0 %781, %v45_v5   ;;  %s835_s15 = scalar_lea.vmem %s668_s14, 256  ;;  %p840_p3 = scmp.lt.s32.totalorder %s668_s14, %s668_s14 }
  0x2d   :  { %p836_p2 = scmp.ne.s32.totalorder %s668_s14, %s835_s15  ;;  %p841_p4 = scmp.lt.s32.totalorder %s835_s15, %s835_s15 }
  0x2f   :  { %231 = vperm.xlu1 %782, %v228_v12   ;;  %p842_p5 = por %p841_p4, %p840_p3 }
  0x30   :  { %314 = vperm.xlu0 %781, %v311_v6  }
  0x31   :  { %724 = vmatmul.mubr.msk.f32.vlgmr.msra.gmra.mrb[0].mxu0 %vm56_vm0, %v45_v5  ;;  %p843_p6 = pnand %p842_p5, %p836_p2 }
  0x32   :  { %740 = vmatprep.mubr.msk.f32.mxu0 %vm869_vm2, %v870_v11 }
  0x33   :  { %395 = vperm.xlu1 %782, %v391_v13  }
  0x34   :  { %400 = vperm.xlu0 %781, %v926_v7  }
  0x37   :  { %491 = vperm.xlu1 %782, %v487_v14  }
  0x38   :  { %496 = vperm.xlu0 %781, %v930_v8  }
  0xa7   :  { %v49_v15 = vpop.permute.xlu0 %48 }
  0xaa   :  { %v148_v25 = vpop.permute.xlu1 %147 }
  0xab   :  { %v54_v16 = vpop.permute.xlu0 %53 }
  0xae   :  { %v232_v30 = vpop.permute.xlu1 %231 }
  0xaf   :  { %v315_v34 = vpop.permute.xlu0 %314 }
  0xb2   :  { %v396_v41 = vpop.permute.xlu1 %395 }
  0xb3   :  { %v401_v39 = vpop.permute.xlu0 %400 }
  0xb6   :  { %v492_v50 = vpop.permute.xlu1 %491 }
  0xb7   :  { %v497_v48 = vpop.permute.xlu0 %496 }
 0x104   :  { %v725_v17 = vpop.f32.mrb[0].mxu0 }
 0x105   :  { %v139_v18 = vadd.f32 %v725_v17, %v54_v16  ;;  %v133_v19 = vpop.f32.mrb[1].mxu0 }
 0x106   :  { %v134_v20 = vadd.f32 %v133_v19, %v49_v15 }
 0x107   :  { %v143_v21 = vmax.f32 %v139_v18, 0.0 }
 0x108   :  { %v142_v22 = vmax.f32 %v134_v20, 0.0 }
 0x10a   :  { %v762_v24 = vpack.c.bf16 %v143_v21, %v142_v22 }
 0x10c   :  { %764 = vmatpush3.bf16.msk.msra.mxu1 %vm935_vm5, %v762_v24 }
 0x10d   :  { %733 = vmatprep.subr.mxu1 %v870_v11 }
 0x10f   :  { %731 = vmatmul.mubr.msk.f32.vlgmr.msra.gmra.mrb[0].mxu1 %vm150_vm6, %v144_v10 }
 0x110   :  { %735 = vmatprep.mubr.msk.f32.mxu1 %vm869_vm2, %v870_v11 }
 0x1e2   :  { %v223_v26 = vpop.f32.mrb[0].mxu1 }
 0x1e3   :  { %v224_v27 = vadd.f32 %v223_v26, %v148_v25  ;;  %v732_v28 = vpop.f32.mrb[1].mxu1 }
 0x1e5   :  { %v227_v29 = vmax.f32 %v224_v27, 0.0 }
 0x1e7   :  { %734 = vmatpush3.msk.msra.mxu1 %vm237_vm7, %v227_v29 }
 0x1e8   :  { %736 = vmatmul.mubr.msk.f32.vlgmr.msra.gmra.mrb[2].mxu1 %vm234_vm8, %v228_v12 }
 0x1e9   :  { %745 = vmatprep.mubr.msk.f32.mxu1 %vm234_vm8, %v391_v13 }
 0x2bb   :  { %v307_v31 = vpop.f32.mrb[2].mxu1 }
 0x2bc   :  { %v308_v32 = vadd.f32 %v307_v31, %v232_v30  ;;  %v737_v33 = vpop.f32.mrb[3].mxu1 }
 0x2be   :  { %627 = vxpose.xlu0.b32.start.end [1/1] (short) (narrow) %v308_v32, 16  ;;  %739 = vmatpush3.msra.mxu0 %v308_v32 }
 0x2bf   :  { %741 = vmatmul.mubr.msk.f32.vlgmr.msra.gmra.mrb[2].mxu0 %vm317_vm9, %v311_v6 }
 0x2c0   :  { %752 = vmatprep.mubr.msk.f32.mxu0 %vm150_vm6, %v487_v14 }
 0x33e   :  { %v643_v61 = vpop.trf.xlu0 }
 0x33f   :  { %660 = vst.msk [vmem:[%s983_s3] sm:$0xff] %vm659_vm10, %v643_v61 }
 0x342   :  { %v644_v63 = vpop.trf.xlu0 }
 0x343   :  { %661 = vst.msk [vmem:[%s983_s3 + $0x8] sm:$0xff] %vm659_vm10, %v644_v63 }
 0x392   :  { %v386_v35 = vpop.f32.mrb[2].mxu0 }
 0x393   :  { %v387_v36 = vadd.f32 %v386_v35, %v315_v34  ;;  %v742_v37 = vpop.f32.mrb[3].mxu0 }
 0x395   :  { %v390_v38 = vmax.f32 %v387_v36, 0.0 }
 0x397   :  { %743 = vmatprep.subr.msk.mxu1 %vm237_vm7, %v390_v38 }
 0x398   :  { %744 = vmatpush3.msk.msra.mxu1 %vm237_vm7, %v390_v38 }
 0x399   :  { %746 = vmatmul.mubr.msk.f32.vlgmr.msra.gmra.mrb[4].mxu1 %vm234_vm8, %v926_v7 }
 0x46c   :  { %v747_v40 = vpop.f32.mrb[4].mxu1 }
 0x46d   :  { %v482_v42 = vadd.f32 %v747_v40, %v401_v39  ;;  %v476_v43 = vpop.f32.mrb[5].mxu1 }
 0x46e   :  { %v477_v44 = vadd.f32 %v476_v43, %v396_v41 }
 0x46f   :  { %v486_v45 = vmax.f32 %v482_v42, 0.0 }
 0x470   :  { %v485_v46 = vmax.f32 %v477_v44, 0.0 }
 0x472   :  { %v765_v47 = vpack.c.bf16 %v486_v45, %v485_v46 }
 0x474   :  { %767 = vmatprep.subr.msk.bf16.mxu0 %vm935_vm5, %v765_v47 }
 0x475   :  { %770 = vmatpush3.bf16.msk.msra.mxu0 %vm935_vm5, %v765_v47 }
 0x478   :  { %753 = vmatmul.mubr.msk.f32.vlgmr.msra.gmra.mrb[4].mxu0 %vm150_vm6, %v930_v8 }
 0x54b   :  { %v754_v49 = vpop.f32.mrb[4].mxu0 }
 0x54c   :  { %v578_v51 = vadd.f32 %v754_v49, %v497_v48  ;;  %v572_v52 = vpop.f32.mrb[5].mxu0 }
 0x54d   :  { %v573_v53 = vadd.f32 %v572_v52, %v492_v50 }
 0x54e   :  { %v700_v54 = vmul.f32 -1.442695, %v578_v51 }
 0x54f   :  { %v699_v55 = vmul.f32 -1.442695, %v573_v53 }
 0x550   :  { %783 = vpow2.f32 %v700_v54 }
 0x551   :  { %785 = vpow2.f32 %v699_v55 }
 0x55a   :  { %v784_v56 = vpop.eup %783 }
 0x55b   :  { %v786_v57 = vpop.eup %785  ;;  %v588_v59 = vadd.f32 1.0, %v784_v56 }
 0x55c   :  { %v587_v58 = vadd.f32 1.0, %v786_v57 }
 0x55e   :  { %787 = vrcp.f32 %v587_v58 }
 0x55f   :  { %789 = vrcp.f32 %v588_v59 }
 0x568   :  { %v788_v60 = vpop.eup %787 }
 0x569   :  { %593 = vxpose.xlu1.b32.start [1/2] (short) (narrow) %v788_v60, 16  ;;  %v790_v62 = vpop.eup %789 }
 0x56d   :  { %594 = vxpose.xlu1.b32.end [2/2] (short) (narrow) %v790_v62, 16 }
 0x5e9   :  { %v609_v0 = vpop.trf.xlu1 }
 0x5ea   :  { %625 = vst.msk [vmem:[#allocation7] sm:$0xff] %vm56_vm0, %v609_v0 }
 0x5ed   :  { %v610_v1 = vpop.trf.xlu1 }
 0x5ee   :  { %626 = vst.msk [vmem:[#allocation7 + $0x8] sm:$0xff] %vm56_vm0, %v610_v1 }
 0x5ef   :  { %846 = shalt.err (!%p843_p6)
}
 0x5f0   :  { %s847_s3 = scalar_lea.hbm %s982_s2, 256 }
 0x5f1   :  { %p848_p7 = scmp.ne.s32.totalorder %s982_s2, %s847_s3  ;;  %p851_p8 = scmp.lt.u32.totalorder %s847_s3, %s982_s2 }
 0x5f3   :  { %p853_p9 = pnand %p851_p8, %p848_p7 }
 0x5f5   :  { %856 = shalt.err (!%p853_p9)
}
 0x5f6   :  { %673 = dma.vmem_to_hbm [thread:$0]  %s668_s14, 256, %s982_s2, [#allocation4], %s864_s22, %s864_s22, %s865_s23  }
 0x5f7   :  { %861 = dma.done.wait [#allocation4], 256  }
 0x5f8   :  { %862 = vsyncadd [#allocation4], 4294967040 }
 0x5f9   :  { %681 = vsyncpa [#allocation3], 1 }
 0x5fa   :  { %682 = vsyncpa [#allocation6], 1 }
 0x5fb   :  { %683 = vsyncpa [#allocation4], 1 }

</bundles_post_ra>
